<compile_context>
chip_gen: v6e
topology: v6e:2x2x1
jax: 0.10.0
libtpu: 0.0.40
codegen_flags: <defaults>
</compile_context>

<pallas_src>
import math
from functools import partial

import numpy as np
import jax
import jax.numpy as jnp
from jax.experimental import pallas as pl
from jax.experimental.pallas import tpu as pltpu

# ---------------- deterministic "module config" (args of __init__) ----------
ARGS = {
    "pos_cls_weight": 2.0,
    "cls": {"alpha": 0.25, "gamma": 2.0, "weight": 1.0},
    "reg": {"sigma": 3.0, "weight": 2.0},
    "dir": {"weight": 0.2,
            "args": {"dir_offset": 0.7853, "num_bins": 2, "anchor_yaw": [0, 90]}},
}

MAX_TILE_R = 512        # 512 rows x 128 lanes = 64Ki anchors per grid step


# ----------------------------- Pallas kernel --------------------------------
def _make_kernel(pos_cls_weight, alpha, gamma, sigma, dir_offset, num_bins,
                 tile_r, valid_rows):
    inv_sig2 = 1.0 / (sigma * sigma)
    half_sig2 = 0.5 * sigma * sigma
    two_pi = 2.0 * math.pi
    inv_two_pi = 1.0 / two_pi
    inv_period = float(num_bins) / two_pi
    needs_mask = valid_rows is not None          # trace-time flag

    def kernel(yaw_ref,            # SMEM (A,)          anchor yaw (rad)
               cls_p_ref,          # VMEM (TR,128)      cls logits
               pos_ref,            # VMEM (TR,128)      pos_equal_one {0,1}
               neg_ref,            # VMEM (TR,128)      neg_equal_one {0,1}
               reg_p_ref,          # VMEM (7,TR,128)    reg preds
               reg_t_ref,          # VMEM (7,TR,128)    reg targets
               dir_l_ref,          # VMEM (NB,TR,128)   dir logits
               out_ref):           # VMEM (3,128)       per-(b,a,t) lane partials
        a = pl.program_id(1)
        t = pl.program_id(2)
        yaw = yaw_ref[a]                                 # scalar

        labels = pos_ref[...].astype(jnp.float32)        # {0,1} mask
        neg_m = neg_ref[...].astype(jnp.float32)         # {0,1} mask
        pos_b = labels > 0.0

        # ---------------- sigmoid focal classification loss ------------------
        p = cls_p_ref[...].astype(jnp.float32)
        cls_w = neg_m + labels * pos_cls_weight          # un-normalized weight
        z = jnp.exp(-jnp.abs(p))                         # single exp, reused
        ce = jnp.maximum(p, 0.0) - p * labels + jnp.log(1.0 + z)
        inv_1pz = 1.0 / (1.0 + z)                        # exact reciprocal
        prob = jnp.where(p >= 0.0, inv_1pz, 1.0 - inv_1pz)   # sigmoid(p)
        one_m_pt = jnp.where(pos_b, 1.0 - prob, prob)        # 1 - p_t
        if gamma == 2.0:                                 # trace-time guard
            modulating = one_m_pt * one_m_pt
        else:
            modulating = jnp.power(one_m_pt, gamma)
        alpha_w = jnp.where(pos_b, alpha, 1.0 - alpha)
        cls_term = modulating * alpha_w * ce * cls_w

        # -------- smooth-L1 regression loss (sin-difference on channel 6) ----
        rp = reg_p_ref[...].astype(jnp.float32)          # (7,TR,128)
        rt = reg_t_ref[...].astype(jnp.float32)

        def smooth_l1(ad):
            return jnp.where(ad <= inv_sig2,
                             half_sig2 * ad * ad,
                             ad - 0.5 * inv_sig2)

        rt6 = rt[6]
        ad6 = jnp.abs(jnp.sin(rp[6] - rt6))              # one sin per anchor
        sl1 = jnp.sum(smooth_l1(jnp.abs(rp[0:6] - rt[0:6])), axis=0) \
            + smooth_l1(ad6)
        reg_term = sl1 * labels                          # reg weight = pos mask

        # ---------------- direction softmax cross-entropy --------------------
        x = (rt6 + yaw) - dir_offset
        offset_rot = x - jnp.floor(x * inv_two_pi) * two_pi      # limit_period
        logits = dir_l_ref[...]                          # (NB,TR,128)
        if num_bins == 2:
            l0 = logits[0].astype(jnp.float32)
            l1 = logits[1].astype(jnp.float32)
            lse = jnp.maximum(l0, l1) + jnp.log(1.0 + jnp.exp(-jnp.abs(l0 - l1)))
            sel = jnp.where(offset_rot >= math.pi, l1, l0)
        else:   # general (small) bin-count fallback
            ls = [logits[k].astype(jnp.float32) for k in range(num_bins)]
            dir_cls = jnp.clip(jnp.floor(offset_rot * inv_period),
                               0.0, float(num_bins - 1))
            m = ls[0]
            for k in range(1, num_bins):
                m = jnp.maximum(m, ls[k])
            s = jnp.exp(ls[0] - m)
            for k in range(1, num_bins):
                s = s + jnp.exp(ls[k] - m)
            lse = m + jnp.log(s)
            sel = ls[0]
            for k in range(1, num_bins):
                sel = jnp.where(dir_cls >= float(k), ls[k], sel)
        dir_term = (lse - sel) * labels

        # ------- mask ragged tail rows (only if tiling doesn't divide) -------
        if needs_mask:
            row = jax.lax.broadcasted_iota(jnp.int32, cls_term.shape, 0)
            valid = (t * tile_r + row) < valid_rows
            cls_term = jnp.where(valid, cls_term, 0.0)   # NaN-safe masking
            reg_term = jnp.where(valid, reg_term, 0.0)
            dir_term = jnp.where(valid, dir_term, 0.0)

        # per-tile cross-sublane reduce (XLU) -> (3,128) lane partials
        out_ref[0:1, :] = jnp.sum(cls_term, axis=0, keepdims=True)
        out_ref[1:2, :] = jnp.sum(reg_term, axis=0, keepdims=True)
        out_ref[2:3, :] = jnp.sum(dir_term, axis=0, keepdims=True)

    return kernel


# ----------------------------- jitted implementation -------------------------
@partial(jax.jit, static_argnames=("cfg",))
def _point_pillar_loss_impl(psm, rm, dm, pos, neg, tgt, yaw, cfg):
    (pos_cls_weight, alpha, gamma, cls_weight, sigma, reg_weight,
     dir_weight, dir_offset, num_bins) = cfg

    B, H, W, A = pos.shape
    HW = H * W
    r0 = -(-HW // 128)                 # valid rows after lane packing
    hw_pad = r0 * 128

    if r0 <= MAX_TILE_R:
        tile_r, num_t = r0, 1
    else:
        tile_r = MAX_TILE_R            # multiple of 8 (and 16 for bf16 packing)
        num_t = -(-r0 // MAX_TILE_R)
    valid_rows = None if num_t * tile_r == r0 else r0   # ragged tail -> in-kernel mask

    def pad_hw(x):                     # no-op when HW % 128 == 0 (common case)
        d = hw_pad - x.shape[-1]
        if d == 0:
            return x
        return jnp.pad(x, [(0, 0)] * (x.ndim - 1) + [(0, d)])

    # predictions: pure reshapes of the NCHW heads (anchor-major is native)
    cls_p = pad_hw(psm.reshape(B, A, HW)).reshape(B, A, r0, 128)
    reg_p = pad_hw(rm.reshape(B, A, 7, HW)).reshape(B, A, 7, r0, 128)
    dir_p = pad_hw(dm.reshape(B, A, num_bins, HW)).reshape(B, A, num_bins, r0, 128)

    # targets: single transpose (fused with pad+reshape under jit) to the same
    # anchor-major / spatial-minor layout.
    pos_t = pad_hw(jnp.transpose(pos.reshape(B, HW, A), (0, 2, 1))
                   ).reshape(B, A, r0, 128)
    neg_t = pad_hw(jnp.transpose(neg.reshape(B, HW, A), (0, 2, 1))
                   ).reshape(B, A, r0, 128)
    tgt_t = pad_hw(jnp.transpose(tgt.reshape(B, HW, A, 7), (0, 2, 3, 1))
                   ).reshape(B, A, 7, r0, 128)

    kernel = _make_kernel(pos_cls_weight, alpha, gamma, sigma, dir_offset,
                          num_bins, tile_r, valid_rows)

    smem = pl.BlockSpec(memory_space=pltpu.SMEM)
    spec_1 = pl.BlockSpec((None, None, tile_r, 128), lambda b, a, t: (b, a, t, 0))
    spec_7 = pl.BlockSpec((None, None, 7, tile_r, 128),
                          lambda b, a, t: (b, a, 0, t, 0))
    spec_d = pl.BlockSpec((None, None, num_bins, tile_r, 128),
                          lambda b, a, t: (b, a, 0, t, 0))

    n_elem = B * A * hw_pad
    bytes_in = sum(int(x.size) * x.dtype.itemsize
                   for x in (cls_p, pos_t, neg_t, reg_p, tgt_t, dir_p))
    cost = pl.CostEstimate(flops=90 * n_elem,
                           transcendentals=6 * n_elem,
                           bytes_accessed=bytes_in + B * A * num_t * 3 * 128 * 4)

    parts = pl.pallas_call(
        kernel,
        out_shape=jax.ShapeDtypeStruct((B, A, num_t, 3, 128), jnp.float32),
        grid=(B, A, num_t),
        in_specs=[smem, spec_1, spec_1, spec_1, spec_7, spec_7, spec_d],
        out_specs=pl.BlockSpec((None, None, None, 3, 128),
                               lambda b, a, t: (b, a, t, 0, 0)),
        compiler_params=pltpu.CompilerParams(
            dimension_semantics=("parallel", "parallel", "parallel")),
        cost_estimate=cost,
    )(yaw, cls_p, pos_t, neg_t, reg_p, tgt_t, dir_p)

    # per-batch 1/clamp(#pos,1) normalizer, hoisted out of the kernel
    inv_norm = 1.0 / jnp.maximum(
        jnp.sum((pos > 0).astype(jnp.float32), axis=(1, 2, 3)), 1.0)      # (B,)

    per_b = jnp.sum(parts, axis=(1, 2, 4)) * inv_norm[:, None]            # (B,3)
    sums = jnp.sum(per_b, axis=0)                                         # (3,)
    cls_loss = sums[0] * cls_weight / B
    reg_loss = sums[1] * reg_weight / B
    dir_loss = sums[2] * dir_weight / B
    total_loss = cls_loss + reg_loss + dir_loss
    return total_loss, cls_loss, reg_loss, dir_loss


# ----------------------------- user-facing wrapper ---------------------------
def point_pillar_loss(output_dict, target_dict, args=ARGS):
    psm = output_dict["psm"]                      # (B, A, H, W)       cls logits
    rm = output_dict["rm"]                        # (B, 7A, H, W)      reg preds
    dm = output_dict["dm"]                        # (B, NB*A, H, W)    dir logits
    pos = target_dict["pos_equal_one"]            # (B, H, W, A)
    neg = target_dict["neg_equal_one"]            # (B, H, W, A)
    tgt = target_dict["targets"]                  # (B, H, W, 7A)

    A = pos.shape[-1]
    num_bins = int(args["dir"]["args"]["num_bins"])
    yaw = jnp.deg2rad(jnp.asarray(args["dir"]["args"]["anchor_yaw"], jnp.float32))
    assert yaw.shape[0] == A, "anchor_yaw length must equal anchor_num"

    cfg = (float(args["pos_cls_weight"]),
           float(args["cls"]["alpha"]), float(args["cls"]["gamma"]),
           float(args["cls"]["weight"]),
           float(args["reg"]["sigma"]), float(args["reg"]["weight"]),
           float(args["dir"]["weight"]),
           float(args["dir"]["args"]["dir_offset"]),
           num_bins)

    total_loss, cls_loss, reg_loss, dir_loss = _point_pillar_loss_impl(
        psm, rm, dm, pos, neg, tgt, yaw, cfg)
    return total_loss, {"total_loss": total_loss, "cls_loss": cls_loss,
                        "reg_loss": reg_loss, "dir_loss": dir_loss}


# ----------------------------- pure-JAX reference ----------------------------
def reference_loss(output_dict, target_dict, args=ARGS):
    psm, rm, dm = (output_dict[k].astype(jnp.float32) for k in ("psm", "rm", "dm"))
    pos = target_dict["pos_equal_one"].astype(jnp.float32)
    neg = target_dict["neg_equal_one"].astype(jnp.float32)
    tgt = target_dict["targets"].astype(jnp.float32)
    B = pos.shape[0]

    cls_labls = pos.reshape(B, -1, 1)
    positives = cls_labls > 0
    negatives = neg.reshape(B, -1, 1) > 0
    pn = jnp.maximum(jnp.sum(positives, axis=1, keepdims=True).astype(jnp.float32), 1.0)

    cls_preds = jnp.transpose(psm, (0, 2, 3, 1)).reshape(B, -1, 1)
    cls_w = (positives * args["pos_cls_weight"] + negatives * 1.0) / pn
    t = cls_labls
    ce = (jnp.maximum(cls_preds, 0.0) - cls_preds * t
          + jnp.log(1.0 + jnp.exp(-jnp.abs(cls_preds))))
    prob = 1.0 / (1.0 + jnp.exp(-cls_preds))
    p_t = t * prob + (1 - t) * (1 - prob)
    focal = ((1 - p_t) ** args["cls"]["gamma"]
             * (t * args["cls"]["alpha"] + (1 - t) * (1 - args["cls"]["alpha"]))
             * ce * cls_w)
    cls_loss = jnp.sum(focal) * args["cls"]["weight"] / B

    reg_w = positives.astype(jnp.float32) / pn
    rp = jnp.transpose(rm, (0, 2, 3, 1)).reshape(B, -1, 7)
    rt = tgt.reshape(B, -1, 7)
    rp6 = jnp.sin(rp[..., 6:7]) * jnp.cos(rt[..., 6:7])
    rt6 = jnp.cos(rp[..., 6:7]) * jnp.sin(rt[..., 6:7])
    rp2 = jnp.concatenate([rp[..., :6], rp6], axis=-1)
    rt2 = jnp.concatenate([rt[..., :6], rt6], axis=-1)
    ad = jnp.abs(rp2 - rt2)
    sigma = args["reg"]["sigma"]
    lt = (ad <= 1 / sigma**2).astype(jnp.float32)
    sl1 = lt * 0.5 * (ad * sigma) ** 2 + (ad - 0.5 / sigma**2) * (1 - lt)
    reg_loss = jnp.sum(sl1 * reg_w) * args["reg"]["weight"] / B

    nbins = args["dir"]["args"]["num_bins"]
    doff = args["dir"]["args"]["dir_offset"]
    ayaw = jnp.deg2rad(jnp.asarray(args["dir"]["args"]["anchor_yaw"], jnp.float32))
    A = ayaw.shape[0]
    N = rt.shape[1]
    amap = jnp.tile(ayaw, N // A)
    rot_gt = rt[..., 6] + amap[None, :]
    x = rot_gt - doff
    offset_rot = x - jnp.floor(x / (2 * np.pi)) * (2 * np.pi)
    dir_cls = jnp.clip(jnp.floor(offset_rot / (2 * np.pi / nbins)),
                       0, nbins - 1).astype(jnp.int32)
    dl = jnp.transpose(dm, (0, 2, 3, 1)).reshape(B, -1, 2)
    m = jnp.max(dl, axis=-1)
    lse = m + jnp.log(jnp.sum(jnp.exp(dl - m[..., None]), axis=-1))
    sel = jnp.take_along_axis(dl, dir_cls[..., None], axis=-1)[..., 0]
    dir_loss = jnp.sum((lse - sel) * reg_w[..., 0]) * args["dir"]["weight"] / B

    return cls_loss + reg_loss + dir_loss


# --------------------------------- main --------------------------------------
if __name__ == "__main__":
    key = jax.random.PRNGKey(0)
    k1, k2, k3, k4, k5 = jax.random.split(key, 5)

    B, H, W, A = 2, 16, 20, 2        # anchor_num = 2; HW = 320 (exercises lane pad)

    psm = jax.random.normal(k1, (B, A, H, W), jnp.float32)          # cls logits
    rm = jax.random.normal(k2, (B, 7 * A, H, W), jnp.float32)       # reg preds
    dm = jax.random.normal(k3, (B, 2 * A, H, W), jnp.float32)       # dir logits
    pos_equal_one = jax.random.bernoulli(k4, 0.05, (B, H, W, A)).astype(jnp.float32)
    neg_equal_one = 1.0 - pos_equal_one
    targets = jax.random.normal(k5, (B, H, W, 7 * A), jnp.float32)

    output_dict = {"psm": psm, "rm": rm, "dm": dm}
    target_dict = {"pos_equal_one": pos_equal_one,
                   "neg_equal_one": neg_equal_one,
                   "targets": targets}

    total_loss, loss_dict = point_pillar_loss(output_dict, target_dict)
    total_loss = jax.block_until_ready(total_loss)

    ref = jax.block_until_ready(reference_loss(output_dict, target_dict))
    np.testing.assert_allclose(np.asarray(total_loss), np.asarray(ref),
                               rtol=2e-2, atol=1e-3)
    print("KERNEL_OK")
</pallas_src>

<mosaic_0001>
module attributes {stable_mosaic.version = 11 : i64} {
  func.func @kernel(%arg0: i32, %arg1: i32, %arg2: i32, %arg3: memref<2xf32, #tpu.memory_space<smem>>, %arg4: memref<1x1x3x128xf32, #tpu.memory_space<vmem>>, %arg5: memref<1x1x3x128xf32, #tpu.memory_space<vmem>>, %arg6: memref<1x1x3x128xf32, #tpu.memory_space<vmem>>, %arg7: memref<1x1x7x3x128xf32, #tpu.memory_space<vmem>>, %arg8: memref<1x1x7x3x128xf32, #tpu.memory_space<vmem>>, %arg9: memref<1x1x2x3x128xf32, #tpu.memory_space<vmem>>, %arg10: memref<1x1x1x3x128xf32, #tpu.memory_space<vmem>>) attributes {dimension_semantics = [#tpu.dimension_semantics<parallel>, #tpu.dimension_semantics<parallel>, #tpu.dimension_semantics<parallel>], iteration_bounds = array<i64: 2, 2, 1>, scalar_prefetch = 0 : i64, scratch_operands = 0 : i64, tpu.core_type = #tpu.core_type<tc>, window_params = [{transform_indices = @transform_0, window_bounds = array<i64: 2>}, {transform_indices = @transform_1, window_bounds = array<i64: 1, 1, 3, 128>}, {transform_indices = @transform_2, window_bounds = array<i64: 1, 1, 3, 128>}, {transform_indices = @transform_3, window_bounds = array<i64: 1, 1, 3, 128>}, {transform_indices = @transform_4, window_bounds = array<i64: 1, 1, 7, 3, 128>}, {transform_indices = @transform_5, window_bounds = array<i64: 1, 1, 7, 3, 128>}, {transform_indices = @transform_6, window_bounds = array<i64: 1, 1, 2, 3, 128>}, {transform_indices = @transform_7, window_bounds = array<i64: 1, 1, 1, 3, 128>}]} {
    %0 = arith.index_cast %arg1 : i32 to index
    %1 = memref.load %arg3[%0] : memref<2xf32, #tpu.memory_space<smem>>
    %c0 = arith.constant 0 : index
    %c0_0 = arith.constant 0 : index
    %c0_1 = arith.constant 0 : index
    %c0_2 = arith.constant 0 : index
    %2 = vector.load %arg5[%c0, %c0_0, %c0_1, %c0_2] : memref<1x1x3x128xf32, #tpu.memory_space<vmem>>, vector<1x1x3x128xf32>
    %3 = vector.shape_cast %2 : vector<1x1x3x128xf32> to vector<3x128xf32>
    %c0_3 = arith.constant 0 : index
    %c0_4 = arith.constant 0 : index
    %c0_5 = arith.constant 0 : index
    %c0_6 = arith.constant 0 : index
    %4 = vector.load %arg6[%c0_3, %c0_4, %c0_5, %c0_6] : memref<1x1x3x128xf32, #tpu.memory_space<vmem>>, vector<1x1x3x128xf32>
    %5 = vector.shape_cast %4 : vector<1x1x3x128xf32> to vector<3x128xf32>
    %cst = arith.constant 0.000000e+00 : f32
    %6 = vector.broadcast %cst : f32 to vector<3x128xf32>
    %7 = arith.cmpf ogt, %3, %6 : vector<3x128xf32>
    %c0_7 = arith.constant 0 : index
    %c0_8 = arith.constant 0 : index
    %c0_9 = arith.constant 0 : index
    %c0_10 = arith.constant 0 : index
    %8 = vector.load %arg4[%c0_7, %c0_8, %c0_9, %c0_10] : memref<1x1x3x128xf32, #tpu.memory_space<vmem>>, vector<1x1x3x128xf32>
    %9 = vector.shape_cast %8 : vector<1x1x3x128xf32> to vector<3x128xf32>
    %cst_11 = arith.constant 2.000000e+00 : f32
    %10 = vector.broadcast %cst_11 : f32 to vector<3x128xf32>
    %11 = arith.mulf %3, %10 : vector<3x128xf32>
    %12 = arith.addf %5, %11 : vector<3x128xf32>
    %13 = math.absf %9 : vector<3x128xf32>
    %cst_12 = arith.constant 0.000000e+00 : f32
    %14 = vector.broadcast %cst_12 : f32 to vector<3x128xf32>
    %15 = arith.subf %14, %13 : vector<3x128xf32>
    %16 = math.exp %15 : vector<3x128xf32>
    %cst_13 = arith.constant 0.000000e+00 : f32
    %17 = vector.broadcast %cst_13 : f32 to vector<3x128xf32>
    %18 = arith.maximumf %9, %17 : vector<3x128xf32>
    %19 = arith.mulf %9, %3 : vector<3x128xf32>
    %20 = arith.subf %18, %19 : vector<3x128xf32>
    %cst_14 = arith.constant 1.000000e+00 : f32
    %21 = vector.broadcast %cst_14 : f32 to vector<3x128xf32>
    %22 = arith.addf %21, %16 : vector<3x128xf32>
    %23 = math.log %22 : vector<3x128xf32>
    %24 = arith.addf %20, %23 : vector<3x128xf32>
    %cst_15 = arith.constant 1.000000e+00 : f32
    %25 = vector.broadcast %cst_15 : f32 to vector<3x128xf32>
    %26 = arith.addf %25, %16 : vector<3x128xf32>
    %cst_16 = arith.constant 1.000000e+00 : f32
    %27 = vector.broadcast %cst_16 : f32 to vector<3x128xf32>
    %28 = arith.divf %27, %26 : vector<3x128xf32>
    %cst_17 = arith.constant 0.000000e+00 : f32
    %29 = vector.broadcast %cst_17 : f32 to vector<3x128xf32>
    %30 = arith.cmpf oge, %9, %29 : vector<3x128xf32>
    %cst_18 = arith.constant 1.000000e+00 : f32
    %31 = vector.broadcast %cst_18 : f32 to vector<3x128xf32>
    %32 = arith.subf %31, %28 : vector<3x128xf32>
    %33 = arith.select %30, %28, %32 : vector<3x128xi1>, vector<3x128xf32>
    %cst_19 = arith.constant 1.000000e+00 : f32
    %34 = vector.broadcast %cst_19 : f32 to vector<3x128xf32>
    %35 = arith.subf %34, %33 : vector<3x128xf32>
    %36 = arith.select %7, %35, %33 : vector<3x128xi1>, vector<3x128xf32>
    %37 = arith.mulf %36, %36 : vector<3x128xf32>
    %cst_20 = arith.constant 2.500000e-01 : f32
    %cst_21 = arith.constant 7.500000e-01 : f32
    %38 = vector.broadcast %cst_20 : f32 to vector<3x128xf32>
    %39 = vector.broadcast %cst_21 : f32 to vector<3x128xf32>
    %40 = arith.select %7, %38, %39 : vector<3x128xi1>, vector<3x128xf32>
    %41 = arith.mulf %37, %40 : vector<3x128xf32>
    %42 = arith.mulf %41, %24 : vector<3x128xf32>
    %43 = arith.mulf %42, %12 : vector<3x128xf32>
    %c0_22 = arith.constant 0 : index
    %c0_23 = arith.constant 0 : index
    %c0_24 = arith.constant 0 : index
    %c0_25 = arith.constant 0 : index
    %c0_26 = arith.constant 0 : index
    %44 = vector.load %arg7[%c0_22, %c0_23, %c0_24, %c0_25, %c0_26] : memref<1x1x7x3x128xf32, #tpu.memory_space<vmem>>, vector<1x1x7x3x128xf32>
    %45 = vector.shape_cast %44 : vector<1x1x7x3x128xf32> to vector<7x3x128xf32>
    %c0_27 = arith.constant 0 : index
    %c0_28 = arith.constant 0 : index
    %c0_29 = arith.constant 0 : index
    %c0_30 = arith.constant 0 : index
    %c0_31 = arith.constant 0 : index
    %46 = vector.load %arg8[%c0_27, %c0_28, %c0_29, %c0_30, %c0_31] : memref<1x1x7x3x128xf32, #tpu.memory_space<vmem>>, vector<1x1x7x3x128xf32>
    %47 = vector.shape_cast %46 : vector<1x1x7x3x128xf32> to vector<7x3x128xf32>
    %48 = vector.extract_strided_slice %47 {offsets = [6, 0, 0], sizes = [1, 3, 128], strides = [1, 1, 1]} : vector<7x3x128xf32> to vector<1x3x128xf32>
    %49 = vector.shape_cast %48 : vector<1x3x128xf32> to vector<3x128xf32>
    %50 = vector.extract_strided_slice %45 {offsets = [6, 0, 0], sizes = [1, 3, 128], strides = [1, 1, 1]} : vector<7x3x128xf32> to vector<1x3x128xf32>
    %51 = vector.shape_cast %50 : vector<1x3x128xf32> to vector<3x128xf32>
    %52 = arith.subf %51, %49 : vector<3x128xf32>
    %53 = math.sin %52 : vector<3x128xf32>
    %54 = math.absf %53 : vector<3x128xf32>
    %55 = vector.extract_strided_slice %45 {offsets = [0, 0, 0], sizes = [6, 3, 128], strides = [1, 1, 1]} : vector<7x3x128xf32> to vector<6x3x128xf32>
    %56 = vector.extract_strided_slice %47 {offsets = [0, 0, 0], sizes = [6, 3, 128], strides = [1, 1, 1]} : vector<7x3x128xf32> to vector<6x3x128xf32>
    %57 = arith.subf %55, %56 : vector<6x3x128xf32>
    %58 = math.absf %57 : vector<6x3x128xf32>
    %cst_32 = arith.constant 0.111111112 : f32
    %59 = vector.broadcast %cst_32 : f32 to vector<6x3x128xf32>
    %60 = arith.cmpf ole, %58, %59 : vector<6x3x128xf32>
    %cst_33 = arith.constant 4.500000e+00 : f32
    %61 = vector.broadcast %cst_33 : f32 to vector<6x3x128xf32>
    %62 = arith.mulf %61, %58 : vector<6x3x128xf32>
    %63 = arith.mulf %62, %58 : vector<6x3x128xf32>
    %cst_34 = arith.constant 0.055555556 : f32
    %64 = vector.broadcast %cst_34 : f32 to vector<6x3x128xf32>
    %65 = arith.subf %58, %64 : vector<6x3x128xf32>
    %66 = arith.select %60, %63, %65 : vector<6x3x128xi1>, vector<6x3x128xf32>
    %cst_35 = arith.constant dense<0.000000e+00> : vector<3x128xf32>
    %67 = vector.multi_reduction <add>, %66, %cst_35 [0] : vector<6x3x128xf32> to vector<3x128xf32>
    %cst_36 = arith.constant 0.111111112 : f32
    %68 = vector.broadcast %cst_36 : f32 to vector<3x128xf32>
    %69 = arith.cmpf ole, %54, %68 : vector<3x128xf32>
    %cst_37 = arith.constant 4.500000e+00 : f32
    %70 = vector.broadcast %cst_37 : f32 to vector<3x128xf32>
    %71 = arith.mulf %70, %54 : vector<3x128xf32>
    %72 = arith.mulf %71, %54 : vector<3x128xf32>
    %cst_38 = arith.constant 0.055555556 : f32
    %73 = vector.broadcast %cst_38 : f32 to vector<3x128xf32>
    %74 = arith.subf %54, %73 : vector<3x128xf32>
    %75 = arith.select %69, %72, %74 : vector<3x128xi1>, vector<3x128xf32>
    %76 = arith.addf %67, %75 : vector<3x128xf32>
    %77 = arith.mulf %76, %3 : vector<3x128xf32>
    %78 = vector.broadcast %1 : f32 to vector<3x128xf32>
    %79 = arith.addf %49, %78 : vector<3x128xf32>
    %cst_39 = arith.constant 7.853000e-01 : f32
    %80 = vector.broadcast %cst_39 : f32 to vector<3x128xf32>
    %81 = arith.subf %79, %80 : vector<3x128xf32>
    %cst_40 = arith.constant 0.159154937 : f32
    %82 = vector.broadcast %cst_40 : f32 to vector<3x128xf32>
    %83 = arith.mulf %81, %82 : vector<3x128xf32>
    %84 = math.floor %83 : vector<3x128xf32>
    %cst_41 = arith.constant 6.28318548 : f32
    %85 = vector.broadcast %cst_41 : f32 to vector<3x128xf32>
    %86 = arith.mulf %84, %85 : vector<3x128xf32>
    %87 = arith.subf %81, %86 : vector<3x128xf32>
    %c0_42 = arith.constant 0 : index
    %c0_43 = arith.constant 0 : index
    %c0_44 = arith.constant 0 : index
    %c0_45 = arith.constant 0 : index
    %c0_46 = arith.constant 0 : index
    %88 = vector.load %arg9[%c0_42, %c0_43, %c0_44, %c0_45, %c0_46] : memref<1x1x2x3x128xf32, #tpu.memory_space<vmem>>, vector<1x1x2x3x128xf32>
    %89 = vector.shape_cast %88 : vector<1x1x2x3x128xf32> to vector<2x3x128xf32>
    %90 = vector.extract_strided_slice %89 {offsets = [0, 0, 0], sizes = [1, 3, 128], strides = [1, 1, 1]} : vector<2x3x128xf32> to vector<1x3x128xf32>
    %91 = vector.shape_cast %90 : vector<1x3x128xf32> to vector<3x128xf32>
    %92 = vector.extract_strided_slice %89 {offsets = [1, 0, 0], sizes = [1, 3, 128], strides = [1, 1, 1]} : vector<2x3x128xf32> to vector<1x3x128xf32>
    %93 = vector.shape_cast %92 : vector<1x3x128xf32> to vector<3x128xf32>
    %94 = arith.maximumf %91, %93 : vector<3x128xf32>
    %95 = arith.subf %91, %93 : vector<3x128xf32>
    %96 = math.absf %95 : vector<3x128xf32>
    %cst_47 = arith.constant 0.000000e+00 : f32
    %97 = vector.broadcast %cst_47 : f32 to vector<3x128xf32>
    %98 = arith.subf %97, %96 : vector<3x128xf32>
    %99 = math.exp %98 : vector<3x128xf32>
    %cst_48 = arith.constant 1.000000e+00 : f32
    %100 = vector.broadcast %cst_48 : f32 to vector<3x128xf32>
    %101 = arith.addf %100, %99 : vector<3x128xf32>
    %102 = math.log %101 : vector<3x128xf32>
    %103 = arith.addf %94, %102 : vector<3x128xf32>
    %cst_49 = arith.constant 3.14159274 : f32
    %104 = vector.broadcast %cst_49 : f32 to vector<3x128xf32>
    %105 = arith.cmpf oge, %87, %104 : vector<3x128xf32>
    %106 = arith.select %105, %93, %91 : vector<3x128xi1>, vector<3x128xf32>
    %107 = arith.subf %103, %106 : vector<3x128xf32>
    %108 = arith.mulf %107, %3 : vector<3x128xf32>
    %cst_50 = arith.constant dense<0.000000e+00> : vector<128xf32>
    %109 = vector.multi_reduction <add>, %43, %cst_50 [0] : vector<3x128xf32> to vector<128xf32>
    %110 = vector.shape_cast %109 : vector<128xf32> to vector<1x128xf32>
    %c0_51 = arith.constant 0 : index
    %c0_52 = arith.constant 0 : index
    %c0_53 = arith.constant 0 : index
    %c0_54 = arith.constant 0 : index
    %c0_55 = arith.constant 0 : index
    %111 = vector.load %arg10[%c0_51, %c0_52, %c0_53, %c0_54, %c0_55] : memref<1x1x1x3x128xf32, #tpu.memory_space<vmem>>, vector<1x1x1x1x128xf32>
    %112 = vector.shape_cast %111 : vector<1x1x1x1x128xf32> to vector<1x128xf32>
    %113 = vector.shape_cast %110 : vector<1x128xf32> to vector<1x1x1x1x128xf32>
    tpu.vector_store %arg10[%c0_51, %c0_52, %c0_53, %c0_54, %c0_55], %113 {strides = array<i32>} : memref<1x1x1x3x128xf32, #tpu.memory_space<vmem>>, vector<1x1x1x1x128xf32>,
    %cst_56 = arith.constant dense<0.000000e+00> : vector<128xf32>
    %114 = vector.multi_reduction <add>, %77, %cst_56 [0] : vector<3x128xf32> to vector<128xf32>
    %115 = vector.shape_cast %114 : vector<128xf32> to vector<1x128xf32>
    %c0_57 = arith.constant 0 : index
    %c0_58 = arith.constant 0 : index
    %c0_59 = arith.constant 0 : index
    %c1 = arith.constant 1 : index
    %c0_60 = arith.constant 0 : index
    %116 = vector.load %arg10[%c0_57, %c0_58, %c0_59, %c1, %c0_60] : memref<1x1x1x3x128xf32, #tpu.memory_space<vmem>>, vector<1x1x1x1x128xf32>
    %117 = vector.shape_cast %116 : vector<1x1x1x1x128xf32> to vector<1x128xf32>
    %118 = vector.shape_cast %115 : vector<1x128xf32> to vector<1x1x1x1x128xf32>
    tpu.vector_store %arg10[%c0_57, %c0_58, %c0_59, %c1, %c0_60], %118 {strides = array<i32>} : memref<1x1x1x3x128xf32, #tpu.memory_space<vmem>>, vector<1x1x1x1x128xf32>,
    %cst_61 = arith.constant dense<0.000000e+00> : vector<128xf32>
    %119 = vector.multi_reduction <add>, %108, %cst_61 [0] : vector<3x128xf32> to vector<128xf32>
    %120 = vector.shape_cast %119 : vector<128xf32> to vector<1x128xf32>
    %c0_62 = arith.constant 0 : index
    %c0_63 = arith.constant 0 : index
    %c0_64 = arith.constant 0 : index
    %c2 = arith.constant 2 : index
    %c0_65 = arith.constant 0 : index
    %121 = vector.load %arg10[%c0_62, %c0_63, %c0_64, %c2, %c0_65] : memref<1x1x1x3x128xf32, #tpu.memory_space<vmem>>, vector<1x1x1x1x128xf32>
    %122 = vector.shape_cast %121 : vector<1x1x1x1x128xf32> to vector<1x128xf32>
    %123 = vector.shape_cast %120 : vector<1x128xf32> to vector<1x1x1x1x128xf32>
    tpu.vector_store %arg10[%c0_62, %c0_63, %c0_64, %c2, %c0_65], %123 {strides = array<i32>} : memref<1x1x1x3x128xf32, #tpu.memory_space<vmem>>, vector<1x1x1x1x128xf32>,
    return
  }
  func.func @transform_0(%arg0: i32, %arg1: i32, %arg2: i32) -> i32 {
    %c0_i32 = arith.constant 0 : i32
    %c0_i32_0 = arith.constant 0 : i32
    return %c0_i32 : i32
  }
  func.func @transform_1(%arg0: i32, %arg1: i32, %arg2: i32) -> (i32, i32, i32, i32) {
    %c0_i32 = arith.constant 0 : i32
    %c0_i32_0 = arith.constant 0 : i32
    return %arg0, %arg1, %arg2, %c0_i32 : i32, i32, i32, i32
  }
  func.func @transform_2(%arg0: i32, %arg1: i32, %arg2: i32) -> (i32, i32, i32, i32) {
    %c0_i32 = arith.constant 0 : i32
    %c0_i32_0 = arith.constant 0 : i32
    return %arg0, %arg1, %arg2, %c0_i32 : i32, i32, i32, i32
  }
  func.func @transform_3(%arg0: i32, %arg1: i32, %arg2: i32) -> (i32, i32, i32, i32) {
    %c0_i32 = arith.constant 0 : i32
    %c0_i32_0 = arith.constant 0 : i32
    return %arg0, %arg1, %arg2, %c0_i32 : i32, i32, i32, i32
  }
  func.func @transform_4(%arg0: i32, %arg1: i32, %arg2: i32) -> (i32, i32, i32, i32, i32) {
    %c0_i32 = arith.constant 0 : i32
    %c0_i32_0 = arith.constant 0 : i32
    %c0_i32_1 = arith.constant 0 : i32
    return %arg0, %arg1, %c0_i32, %arg2, %c0_i32_0 : i32, i32, i32, i32, i32
  }
  func.func @transform_5(%arg0: i32, %arg1: i32, %arg2: i32) -> (i32, i32, i32, i32, i32) {
    %c0_i32 = arith.constant 0 : i32
    %c0_i32_0 = arith.constant 0 : i32
    %c0_i32_1 = arith.constant 0 : i32
    return %arg0, %arg1, %c0_i32, %arg2, %c0_i32_0 : i32, i32, i32, i32, i32
  }
  func.func @transform_6(%arg0: i32, %arg1: i32, %arg2: i32) -> (i32, i32, i32, i32, i32) {
    %c0_i32 = arith.constant 0 : i32
    %c0_i32_0 = arith.constant 0 : i32
    %c0_i32_1 = arith.constant 0 : i32
    return %arg0, %arg1, %c0_i32, %arg2, %c0_i32_0 : i32, i32, i32, i32, i32
  }
  func.func @transform_7(%arg0: i32, %arg1: i32, %arg2: i32) -> (i32, i32, i32, i32, i32) {
    %c0_i32 = arith.constant 0 : i32
    %c0_i32_0 = arith.constant 0 : i32
    %c0_i32_1 = arith.constant 0 : i32
    return %arg0, %arg1, %arg2, %c0_i32, %c0_i32_0 : i32, i32, i32, i32, i32
  }
}

</mosaic_0001>

<bundles_post_ra>
// kernel: _point_pillar_loss_impl.1
= control target key start
LH: loop header
LB: loop body
LE: loop exit
PB: predicated region body
PF: predicated region fallthrough
CT: control target
= control target key end

     0   :  { %s1476_s0 = inlined_call_operand.vmem [shape: f32[2], index: 0, kind: input, shape index: {}]   ;;  %s1477_s1 = inlined_call_operand.vmem [shape: f32[2,2,3,128], index: 1, kind: input, shape index: {}]   ;;  %s1478_s2 = inlined_call_operand.vmem [shape: f32[2,2,3,128], index: 2, kind: input, shape index: {}]   ;;  %s1479_s3 = inlined_call_operand.vmem [shape: f32[2,2,3,128], index: 3, kind: input, shape index: {}]   ;;  %s1480_s4 = inlined_call_operand.vmem [shape: f32[2,2,7,3,128], index: 4, kind: input, shape index: {}]   ;;  %s1481_s5 = inlined_call_operand.vmem [shape: f32[2,2,7,3,128], index: 5, kind: input, shape index: {}]   ;;  %s1482_s6 = inlined_call_operand.vmem [shape: f32[2,2,2,3,128], index: 6, kind: input, shape index: {}]   ;;  %s1483_s7 = inlined_call_operand.vmem [shape: f32[2,2,1,3,128], index: 7, kind: output, shape index: {}]  }
   0x1   :  { %1484 = sst [smem:[#allocation5_spill]] %s1476_s0 }
   0x2   :  { %12 = vsyncpa [#allocation3], 0  ;;  %s1275_s24 = smov 0   ;;  %s1277_s25 = smov 0  }
   0x3   :  { %s1279_s26 = smov 0   ;;  %s1281_s27 = smov 0  }
   0x4   :  { %s1283_s28 = smov 0  }
   0x5 LB: > { %s1056_s29 = sadd.s32 4294967295, %s1225_s28   ;;  %s33_s30 = sadd.s32 1, %s1217_s26  ;;  %s1225_s28 = sphi %s1283_s28, %s18_s28   ;;  %s1221_s27 = sphi %s1281_s27, %s1491_s27   ;;  %s1217_s26 = sphi %s1279_s26, %s1490_s26   ;;  %s1213_s25 = sphi %s1277_s25, %s1489_s25   ;;  %s1209_s24 = sphi %s1275_s24, %s1488_s24  }
   0x6   : > { %p35_p0 = scmp.ge.s32.totalorder %s33_s30, 2  ;;  %s37_s8 = sadd.s32 1, %s1221_s27 }
   0x7   : > { %p1058_p1 = scmp.ge.s32.totalorder %s1225_s28, 1  ;;  %p273_p2 = scmp.lt.s32.totalorder %s1225_s28, 5 }
   0x8   : > { %s1493_s30 = smov (%p35_p0, %s33_s30), 0  ;;  %s1495_s8 = smov (!%p35_p0, %s37_s8), %s1221_s27 }
   0x9   : > { %p1308_p3 = pnand %p1058_p1, %p273_p2  ;;  %p39_p4 = scmp.ge.s32.totalorder %s1495_s8, 2 }
   0xa   : > { %p1312_p5 = scmp.eq.s32.totalorder %s1056_s29, 0  ;;  %s1487_s0 = sld [smem:[#allocation5_spill]] }
   0xb   : > { %p1100_p6 = pneg %p1308_p3  ;;  %s1497_s8 = smov (%p39_p4, %s1495_s8), 0 }
   0xd   : > { %p1101_p7 = pnand %p1312_p5, %p1100_p6 }
   0xf   : > { %p1170_p9 = pneg %p1101_p7 }
  0x10   : > { %s286_s13 = sshll.u32 %s1487_s0, 4  ;;  %s287_s13 = int_to_ptr.vmem [resolvable:$true] %s286_s13 }
  0x11   : > { %s1168_s14 = scalar_lea.vmem %s287_s13, 16  ;;  %p1176_p12 = scmp.lt.s32.totalorder %s287_s13, %s287_s13 }
  0x12   : > { %p1169_p8 = scmp.ne.s32.totalorder %s287_s13, %s1168_s14  ;;  %p1177_p13 = scmp.lt.s32.totalorder %s1168_s14, %s1168_s14 }
  0x14   : > { %p1171_p10 = pnand %p1170_p9, %p1169_p8  ;;  %p1178_p0 = por %p1177_p13, %p1176_p12 }
  0x16   : > { %p1172_p11 = pneg %p1171_p10 }
  0x18   : > { %p1179_p1 = pnand %p1178_p0, %p1172_p11 }
  0x1a   : > { %1182 = shalt.err (!%p1179_p1)
}
  0x1b   : > { %s1227_s15 = smov [#allocation2]   ;;  %386 = sbr.rel (%p1308_p3) target bundleno = 162 (0xa2), region = 48 }
  0x1c   : > { %1103 = dma.vmem_to_smem (!%p1101_p7), %s287_s13, 16, %s1227_s15, [#allocation3]  }
  0x20   : > { %1204 = dma.done.wait (%p1312_p5), [#allocation3], 16  }
  0x21   : > { %1206 = vsyncadd (%p1312_p5), [#allocation3], 4294967280 }
  0x22   : > { %392 = sfence }
  0x23   : > { %p489_p2 = scmp.lt.s32.totalorder %s1213_s25, 1  ;;  %p491_p4 = scmp.lt.s32.totalorder %s1209_s24, 1  ;;  %vm761_vm5 = vcmask 1042432  }
  0x25   : > { %s1499_s25 = smov (!%p489_p2, %s1213_s25), 1 }
  0x26   : > { %s492_s16 = scalar_select %p491_p4, %s1209_s24, 1 }
  0x27   : > { %s1063_s17 = sshll.u32 %s1499_s25, 1  ;;  %s1091_s18 = smul.u32 14, %s1499_s25 }
  0x28   : > { %s497_s19 = sadd.s32 %s1063_s17, %s492_s16  ;;  %s1090_s20 = smul.u32 7, %s492_s16 }
  0x29   : > { %s1335_s21 = sshll.u32 %s497_s19, 2  ;;  %s1071_s10 = sshll.u32 %s492_s16, 1 }
  0x2a   : > { %s499_s29 = scalar_lea.vmem %s1477_s1, %s1335_s21  ;;  %s531_s9 = sadd.s32 %s1091_s18, %s1090_s20 }
  0x2b   : > { %v1341_v0 = vld [vmem:[%s499_s29] sm:$0x7]  ;;  %s1069_s11 = sshll.u32 %s531_s9, 2  ;;  %s1072_s12 = sshll.u32 %s1499_s25, 2 }
  0x2c   : > { %s533_s15 = scalar_lea.vmem %s1480_s4, %s1069_s11  ;;  %v576_v1 = vand.u32 2147483647, %v1341_v0  ;;  %s555_s17 = sadd.s32 %s1072_s12, %s1071_s10  ;;  %vm589_vm13 = vcmp.ge.f32.partialorder %v1341_v0, 0.0 }
  0x2d   : > { %v599_v2 = vld [vmem:[%s533_s15] sm:$0x7]  ;;  %v600_v3 = vld [vmem:[%s533_s15 + $0x4] sm:$0x7]  ;;  %v601_v4 = vld [vmem:[%s533_s15 + $0x8] sm:$0x7]  ;;  %s545_s22 = scalar_lea.vmem %s1481_s5, %s1069_s11  ;;  %s510_s29 = scalar_lea.vmem %s1478_s2, %s1335_s21 }
  0x2e   : > { %s1073_s18 = sshll.u32 %s555_s17, 2  ;;  %v577_v5 = vsub.f32 0.0, %v576_v1  ;;  %v602_v6 = vld [vmem:[%s533_s15 + $0xc] sm:$0x7]  ;;  %v603_v7 = vld [vmem:[%s533_s15 + $0x10] sm:$0x7]  ;;  %s521_s11 = scalar_lea.vmem %s1479_s3, %s1335_s21 }
  0x2f   : > { %v604_v8 = vld [vmem:[%s533_s15 + $0x14] sm:$0x7]  ;;  %v605_v9 = vld [vmem:[%s533_s15 + $0x18] sm:$0x7]  ;;  %v606_v10 = vld [vmem:[%s545_s22] sm:$0x7]  ;;  %s557_s16 = scalar_lea.vmem %s1482_s6, %s1073_s18  ;;  %s1442_s14 = scalar_lea.vmem %s1483_s7, %s1335_s21 }
  0x30   : > { %v578_v11 = vmul.f32 1.442695, %v577_v5  ;;  %v607_v12 = vld [vmem:[%s545_s22 + $0x4] sm:$0x7]  ;;  %v608_v13 = vld [vmem:[%s545_s22 + $0x8] sm:$0x7]  ;;  %v719_v14 = vsub.f32 %v599_v2, %v606_v10 }
  0x31   : > { %v609_v15 = vld [vmem:[%s545_s22 + $0xc] sm:$0x7]  ;;  %v610_v16 = vld [vmem:[%s545_s22 + $0x10] sm:$0x7]  ;;  %v611_v17 = vld [vmem:[%s545_s22 + $0x14] sm:$0x7]  ;;  %v720_v18 = vsub.f32 %v600_v3, %v607_v12  ;;  %v721_v19 = vsub.f32 %v601_v4, %v608_v13 }
  0x32   : > { %1154 = vpow2.f32 %v578_v11  ;;  %v1350_v20 = vld [vmem:[%s545_s22 + $0x18] sm:$0x7]  ;;  %v722_v21 = vsub.f32 %v602_v6, %v609_v15  ;;  %v723_v22 = vsub.f32 %v603_v7, %v610_v16  ;;  %v724_v23 = vsub.f32 %v604_v8, %v611_v17  ;;  %v1362_v33 = vld [vmem:[%s557_s16] sm:$0x7]  ;;  %v1364_v34 = vld [vmem:[%s557_s16 + $0x4] sm:$0x7] }
  0x33   : > { %v1356_v24 = vsub.f32 %v605_v9, %v1350_v20  ;;  %v725_v25 = vand.u32 2147483647, %v719_v14  ;;  %v726_v26 = vand.u32 2147483647, %v720_v18  ;;  %v727_v29 = vand.u32 2147483647, %v721_v19 }
  0x34   : > { %v728_v30 = vand.u32 2147483647, %v722_v21  ;;  %v729_v31 = vand.u32 2147483647, %v723_v22  ;;  %v1360_v32 = vand.u32 2147483647, %v724_v23  ;;  %v790_v48 = vsub.f32 %v1362_v33, %v1364_v34 }
  0x35   : > { %v614_v27 = vand.u32 2147483647, %v1356_v24  ;;  %v617_v28 = vand.u32 2139095040, %v1356_v24  ;;  %vm731_vm0 = vcmp.le.f32.partialorder %v725_v25, 0.11111111  ;;  %v737_v37 = vmul.f32 4.5, %v725_v25 }
  0x36   : > { %vm732_vm1 = vcmp.le.f32.partialorder %v726_v26, 0.11111111  ;;  %vm733_vm2 = vcmp.le.f32.partialorder %v727_v29, 0.11111111  ;;  %vm734_vm3 = vcmp.le.f32.partialorder %v728_v30, 0.11111111 }
  0x37   : > { %v618_v35 = vshrl.u32 %v617_v28, 23  ;;  %v621_v36 = vand.u32 8388607, %v614_v27  ;;  %v738_v40 = vmul.f32 4.5, %v726_v26  ;;  %v739_v41 = vmul.f32 4.5, %v727_v29  ;;  %s1411_s9 = sld [smem:[#allocation2 + %s1209_s24]] }
  0x38   : > { %vm735_vm4 = vcmp.le.f32.partialorder %v729_v31, 0.11111111  ;;  %v740_v42 = vmul.f32 4.5, %v728_v30  ;;  %v741_v43 = vmul.f32 4.5, %v729_v31  ;;  %v742_v44 = vmul.f32 4.5, %v1360_v32 }
  0x39   : > { %v1076_v38 = vadd.s32 4294967169, %v618_v35  ;;  %v622_v39 = vor.u32 8388608, %v621_v36  ;;  %v743_v47 = vmul.f32 %v737_v37, %v725_v25  ;;  %v744_v49 = vmul.f32 %v738_v40, %v726_v26 }
  0x3a   : > { %v745_v50 = vmul.f32 %v739_v41, %v727_v29  ;;  %v746_v51 = vmul.f32 %v740_v42, %v728_v30  ;;  %v1080_v52 = vadd.f32 -0.055555556, %v725_v25  ;;  %v747_v53 = vmul.f32 %v741_v43, %v729_v31 }
  0x3b   : > { %v624_v45 = vadd.s32 1, %v1076_v38  ;;  %v1369_v46 = vshll.u32 %v622_v39, 8  ;;  %v1081_v54 = vadd.f32 -0.055555556, %v726_v26  ;;  %v1082_v55 = vadd.f32 -0.055555556, %v727_v29 }
  0x3c   : > { %v1374_v57 = vmul.f32 %v742_v44, %v1360_v32  ;;  %v1083_v58 = vadd.f32 -0.055555556, %v728_v30  ;;  %v1084_v59 = vadd.f32 -0.055555556, %v729_v31  ;;  %v1085_v63 = vadd.f32 -0.055555556, %v1360_v32 }
  0x3d   : > { %vm625_vm6 = vcmp.gt.s32.totalorder %v624_v45, 0  ;;  %v755_v1 = vsel %vm731_vm0, %v743_v47, %v1080_v52  ;;  %v756_v3 = vsel %vm732_vm1, %v744_v49, %v1081_v54  ;;  %v757_v4 = vsel %vm733_vm2, %v745_v50, %v1082_v55  ;;  %v1396_v54 = vld [vmem:[%s510_s29] sm:$0x7] }
  0x3e   : > { %v626_v56 = vsel %vm625_vm6, %v624_v45, 0  ;;  %v758_v5 = vsel %vm734_vm3, %v746_v51, %v1083_v58  ;;  %v1228_v7 = vmov 683565275   ;;  %v1229_v9 = vmov 2475754826  }
  0x3f   : > { %v1155_v60 = vpop.eup %1154  ;;  %v627_v61 = vshrl.u32 %v626_v56, 5  ;;  %v628_v62 = vand.u32 31, %v626_v56  ;;  %vm736_vm7 = vcmp.le.f32.partialorder %v1360_v32, 0.11111111  ;;  %v759_v11 = vsel %vm735_vm4, %v747_v53, %v1084_v59 }
  0x40   : > { %v583_v2 = vadd.f32 1.0, %v1155_v60  ;;  %v1230_v12 = vmov 2131351028   ;;  %v1231_v14 = vmov 2102212464   ;;  %v762_v38 = vsel %vm761_vm5, %v755_v1, 0.0 }
  0x41   : > { %v629_v6 = vsub.s32 32, %v628_v62  ;;  %v631_v8 = vshll.u32 %v1228_v7, %v628_v62  ;;  %v634_v10 = vshll.u32 %v1229_v9, %v628_v62  ;;  %v637_v13 = vshll.u32 %v1230_v12, %v628_v62 }
  0x42   : > { %1156 = vlog2.f32 %v583_v2  ;;  %v640_v15 = vshll.u32 %v1231_v14, %v628_v62  ;;  %v1232_v16 = vmov 920167782   ;;  %v1233_v25 = vmov 1326507024  }
  0x43   : > { %v643_v17 = vshll.u32 %v1232_v16, %v628_v62  ;;  %1158 = vrcp.f32 %v583_v2  ;;  %v630_v18 = vshrl.u32 %v1228_v7, %v629_v6  ;;  %v632_v19 = vshrl.u32 %v1229_v9, %v629_v6 }
  0x44   : > { %v635_v21 = vshrl.u32 %v1230_v12, %v629_v6  ;;  %v638_v22 = vshrl.u32 %v1231_v14, %v629_v6  ;;  %v641_v23 = vshrl.u32 %v1232_v16, %v629_v6  ;;  %v644_v26 = vshrl.u32 %v1233_v25, %v629_v6 }
  0x45   : > { %vm646_vm8 = vcmp.lt.s32.totalorder %v627_v61, 1  ;;  %v633_v28 = vor.u32 %v632_v19, %v631_v8  ;;  %vm647_vm9 = vcmp.lt.s32.totalorder %v627_v61, 2  ;;  %vm649_vm10 = vcmp.lt.s32.totalorder %v627_v61, 4  ;;  %v571_v19 = vld [vmem:[%s521_s11] sm:$0x7] }
  0x46   : > { %v636_v29 = vor.u32 %v635_v21, %v634_v10  ;;  %v639_v30 = vor.u32 %v638_v22, %v637_v13  ;;  %v642_v31 = vor.u32 %v641_v23, %v640_v15  ;;  %v645_v35 = vor.u32 %v644_v26, %v643_v17 }
  0x47   : > { %vm648_vm11 = vcmp.lt.s32.totalorder %v627_v61, 3  ;;  %v650_v36 = vsel %vm646_vm8, %v630_v18, %v633_v28  ;;  %v763_v39 = vsel %vm761_vm5, %v756_v3, 0.0  ;;  %v765_v53 = vsel %vm761_vm5, %v757_v4, 0.0 }
  0x48   : > { %v654_v37 = vsel %vm646_vm8, %v633_v28, %v636_v29  ;;  %v651_v40 = vsel %vm649_vm10, %v639_v30, 2102212464  ;;  %v655_v41 = vsel %vm649_vm10, %v642_v31, 920167782  ;;  %v658_v42 = vsel %vm646_vm8, %v636_v29, %v639_v30 }
  0x49   : > { %v659_v43 = vsel %vm649_vm10, %v645_v35, 1326507024  ;;  %v652_v44 = vsel %vm648_vm11, %v636_v29, %v651_v40  ;;  %v656_v45 = vsel %vm648_vm11, %v639_v30, %v655_v41  ;;  %v764_v49 = vadd.f32 %v763_v39, %v762_v38 }
  0x4a   : > { %v660_v47 = vsel %vm648_vm11, %v642_v31, %v659_v43  ;;  %v653_v50 = vsel %vm647_vm9, %v650_v36, %v652_v44  ;;  %v657_v51 = vsel %vm647_vm9, %v654_v37, %v656_v45  ;;  %v760_v60 = vsel %vm736_vm7, %v1374_v57, %v1085_v63 }
  0x4b   : > { %v661_v52 = vsel %vm647_vm9, %v658_v42, %v660_v47  ;;  %v1403_v58 = vmul.u32.u64.low %v1369_v46, %v657_v51  ;;  %v1404_v59 = vmul.u32.u64.high %v1369_v46, %v657_v51, %v1403_v58  ;;  %v766_v62 = vadd.f32 %v765_v53, %v764_v49 }
  0x4c   : > { %v1399_v55 = vmul.u32.u64.low %v1369_v46, %v661_v52  ;;  %v1400_v56 = vmul.u32.u64.high %v1369_v46, %v661_v52, %v1399_v55  ;;  %v767_v61 = vsel %vm761_vm5, %v758_v5, 0.0  ;;  %v769_v1 = vsel %vm761_vm5, %v759_v11, 0.0 }
  0x4d   : > { %v791_v2 = vand.u32 2147483647, %v790_v48  ;;  %v581_v3 = vmul.f32 %v1341_v0, %v1396_v54  ;;  %v669_v4 = vmul.u32 %v1369_v46, %v653_v50  ;;  %v768_v6 = vadd.f32 %v767_v61, %v766_v62 }
  0x4e   : > { %v580_v57 = vmax.f32 %v1341_v0, 0.0  ;;  %vm671_vm12 = vc.u32 %v1400_v56, %v1403_v58  ;;  %v672_v63 = vadd.s32 1, %v1404_v59  ;;  %v771_v5 = vsel %vm761_vm5, %v760_v60, 0.0 }
  0x4f   : > { %v1157_v32 = vpop.eup %1156  ;;  %v770_v48 = vadd.f32 %v769_v1, %v768_v6  ;;  %v792_v8 = vsub.f32 0.0, %v791_v2  ;;  %vm572_vm14 = vcmp.gt.f32.partialorder %v1396_v54, 0.0  ;;  %v574_v17 = vmul.f32 2.0, %v1396_v54 }
  0x50   : > { %v1159_v7 = vpop.eup %1158  ;;  %v673_v46 = vsel %vm671_vm12, %v672_v63, %v1404_v59  ;;  %v582_v13 = vsub.f32 %v580_v57, %v581_v3  ;;  %v585_v14 = vmul.f32 0.6931472, %v1157_v32  ;;  %v780_v18 = vstv %s1411_s9 }
  0x51   : > { %v590_v9 = vsub.f32 1.0, %v1159_v7  ;;  %v674_v10 = vadd.s32 %v673_v46, %v669_v4  ;;  %v1426_v11 = vadd.f32 %v771_v5, %v770_v48  ;;  %v793_v12 = vmul.f32 1.442695, %v792_v8 }
  0x52   : > { %v1234_v22 = vmov 0.75   ;;  %v586_v26 = vadd.f32 %v585_v14, %v582_v13  ;;  %v781_v30 = vadd.f32 %v780_v18, %v1350_v20  ;;  %v575_v31 = vadd.f32 %v574_v17, %v571_v19 }
  0x53   : > { %v591_v15 = vsel %vm589_vm13, %v1159_v7, %v590_v9  ;;  %v675_v16 = vadd.s32 536870912, %v674_v10  ;;  %1160 = vpow2.f32 %v793_v12  ;;  %v595_v23 = vsel %vm572_vm14, 0.25, %v1234_v22 }
  0x54   : > { %v592_v0 = vsub.f32 1.0, %v591_v15  ;;  %v1087_v39 = vadd.f32 -0.7853, %v781_v30  ;;  %v670_v20 = vadd.s32 %v1403_v58, %v1400_v56  ;;  %v789_v48 = vmax.f32 %v1362_v33, %v1364_v34 }
  0x55   : > { %v676_v25 = vshrl.u32 %v675_v16, 30  ;;  %vm616_vm1 = vcmp.lt.s32.totalorder %v1356_v24, 0  ;;  %vm615_vm2 = vcmp.le.f32.partialorder %v614_v27, 0.7853982  ;;  %vm706_vm7 = vweird.f32 %v1356_v24 }
  0x56   : > { %v593_v21 = vsel %vm572_vm14, %v592_v0, %v591_v15  ;;  %v783_v44 = vmul.f32 0.15915494, %v1087_v39 }
  0x57   : > { %v594_v28 = vmul.f32 %v593_v21, %v593_v21  ;;  %v677_v29 = vshll.u32 %v676_v25, 30  ;;  %v700_v9 = vsub.s32 4, %v676_v25 }
  0x58   : > { %v784_v52 = vfloor.f32 %v783_v44 }
  0x59   : > { %v596_v35 = vmul.f32 %v595_v23, %v594_v28  ;;  %v678_v36 = vsub.s32 %v674_v10, %v677_v29  ;;  %v701_v15 = vsel %vm616_vm1, %v700_v9, %v676_v25 }
  0x5a   : > { %v785_v3 = vmul.f32 6.2831855, %v784_v52  ;;  %v703_v17 = vsel %vm615_vm2, 0, %v701_v15 }
  0x5b   : > { %v597_v37 = vmul.f32 %v596_v35, %v586_v26  ;;  %v680_v38 = vsub.s32 0, %v678_v36  ;;  %v707_v21 = vadd.s32 3, %v703_v17 }
  0x5c   : > { %v786_v63 = vsub.f32 %v1087_v39, %v785_v3 }
  0x5d   : > { %v598_v40 = vmul.f32 %v597_v37, %v575_v31  ;;  %v1077_v41 = vmin.u32 %v680_v38, %v678_v36  ;;  %v708_v23 = vand.u32 3, %v707_v21 }
  0x5e   : > { %vm799_vm0 = vcmp.ge.f32.partialorder %v786_v63, 3.1415927 }
  0x5f   : > { %v803_v42 = vsel %vm761_vm5, %v598_v40, 0.0  ;;  %v682_v43 = vclz %v1077_v41  ;;  %v800_v12 = vsel %vm799_vm0, %v1364_v34, %v1362_v33  ;;  %vm713_vm3 = vcmp.eq.s32.totalorder %v708_v23, 2 }
  0x60   : > { %v1161_v45 = vpop.eup %1160  ;;  %v804_v47 = vrot.slane %v803_v42, 4  ;;  %vm710_vm4 = vcmp.eq.s32.totalorder %v708_v23, 0  ;;  %vm709_vm6 = vcmp.lt.s32.totalorder %v708_v23, 2 }
  0x61   : > { %v1078_v49 = vadd.s32 4294967294, %v682_v43  ;;  %v795_v50 = vadd.f32 1.0, %v1161_v45 }
  0x62   : > { %v805_v51 = vadd.f32 %v804_v47, %v803_v42 }
  0x63   : > { %vm1079_vm15 = vcmp.lt.s32.totalorder %v1078_v49, 0  ;;  %1162 = vlog2.f32 %v795_v50 }
  0x64   : > { %v685_v53 = vsel %vm1079_vm15, 0, %v1078_v49  ;;  %v806_v55 = vrot.slane %v805_v51, 2 }
  0x65   : > { %v686_v59 = vsub.s32 32, %v685_v53  ;;  %v687_v60 = vshll.u32 %v678_v36, %v685_v53  ;;  %v690_v62 = vsub.s32 4294967266, %v685_v53 }
  0x66   : > { %v807_v61 = vadd.f32 %v806_v55, %v805_v51 }
  0x67   : > { %v688_v1 = vshrl.u32 %v670_v20, %v686_v59  ;;  %v691_v2 = vadd.s32 127, %v690_v62 }
  0x68   : > { %v808_v4 = vrot.slane %v807_v61, 1 }
  0x69   : > { %v689_v56 = vor.u32 %v688_v1, %v687_v60  ;;  %v692_v58 = vshll.u32 %v691_v2, 23 }
  0x6a   : > { %v809_v6 = vadd.f32 %v808_v4, %v807_v61 }
  0x6b   : > { %v693_v32 = vor.u32 4788187, %v692_v58  ;;  %v696_v57 = vcvt.s32.f32 %v689_v56 }
  0x6c   : > { %810 = vst [vmem:[%s1442_s14] sm:$0x1] %v809_v6 }
  0x6d   : > { %v694_v5 = vand.u32 2147483647, %v693_v32 }
  0x6f   : > { %v697_v7 = vmul.f32 %v696_v57, %v694_v5 }
  0x70   : > { %v1163_v8 = vpop.eup %1162 }
  0x71   : > { %v698_v46 = vxor.u32 2147483648, %v697_v7  ;;  %v797_v10 = vmul.f32 0.6931472, %v1163_v8 }
  0x73   : > { %v699_v13 = vsel %vm616_vm1, %v698_v46, %v697_v7  ;;  %v798_v14 = vadd.f32 %v797_v10, %v789_v48 }
  0x74   : > { %v702_v0 = vsel %vm615_vm2, %v1356_v24, %v699_v13 }
  0x75   : > { %1164 = vcosq.f32 %v702_v0  ;;  %v801_v16 = vsub.f32 %v798_v14, %v800_v12 }
  0x76   : > { %1166 = vsinq.f32 %v702_v0 }
  0x77   : > { %v802_v18 = vmul.f32 %v801_v16, %v1396_v54 }
  0x79   : > { %v819_v19 = vsel %vm761_vm5, %v802_v18, 0.0 }
  0x7a   : > { %v820_v27 = vrot.slane %v819_v19, 4 }
  0x7c   : > { %v821_v22 = vadd.f32 %v820_v27, %v819_v19 }
  0x7e   : > { %v822_v26 = vrot.slane %v821_v22, 2 }
  0x80   : > { %v823_v33 = vadd.f32 %v822_v26, %v821_v22 }
  0x82   : > { %v1165_v34 = vpop.eup %1164  ;;  %v824_v25 = vrot.slane %v823_v33, 1 }
  0x83   : > { %v1167_v28 = vpop.eup %1166  ;;  %v714_v29 = vxor.u32 2147483648, %v1165_v34 }
  0x84   : > { %v711_v30 = vxor.u32 2147483648, %v1167_v28  ;;  %v825_v31 = vadd.f32 %v824_v25, %v823_v33 }
  0x85   : > { %v715_v35 = vsel %vm713_vm3, %v714_v29, %v1167_v28 }
  0x86   : > { %v712_v36 = vsel %vm710_vm4, %v1165_v34, %v711_v30  ;;  %826 = vst [vmem:[%s1442_s14 + $0x2] sm:$0x1] %v825_v31 }
  0x87   : > { %v716_v37 = vsel %vm709_vm6, %v712_v36, %v715_v35 }
  0x88   : > { %v717_v38 = vsel %vm706_vm7, nan, %v716_v37 }
  0x89   : > { %v718_v39 = vand.u32 2147483647, %v717_v38 }
  0x8b   : > { %v774_v40 = vmul.f32 4.5, %v718_v39  ;;  %v1086_v41 = vadd.f32 -0.055555556, %v718_v39  ;;  %vm773_vm8 = vcmp.le.f32.partialorder %v718_v39, 0.11111111 }
  0x8d   : > { %v775_v42 = vmul.f32 %v774_v40, %v718_v39 }
  0x8f   : > { %v777_v43 = vsel %vm773_vm8, %v775_v42, %v1086_v41 }
  0x90   : > { %v778_v44 = vadd.f32 %v777_v43, %v1426_v11 }
  0x92   : > { %v779_v45 = vmul.f32 %v778_v44, %v1396_v54 }
  0x94   : > { %v811_v47 = vsel %vm761_vm5, %v779_v45, 0.0 }
  0x95   : > { %v812_v49 = vrot.slane %v811_v47, 4 }
  0x97   : > { %v813_v24 = vadd.f32 %v812_v49, %v811_v47 }
  0x99   : > { %v814_v50 = vrot.slane %v813_v24, 2 }
  0x9b   : > { %v815_v51 = vadd.f32 %v814_v50, %v813_v24 }
  0x9d   : > { %v816_v20 = vrot.slane %v815_v51, 1 }
  0x9f   : > { %v817_v52 = vadd.f32 %v816_v20, %v815_v51 }
  0xa1   : > { %818 = vst [vmem:[%s1442_s14 + $0x1] sm:$0x1] %v817_v52 }
  0xa2 PF: > { %s18_s28 = sadd.s32 1, %s1225_s28   ;;  %s1488_s24 = smov %s1217_s26 }
  0xa3   : > { %p15_p3 = scmp.ge.s32.totalorder %s18_s28, 6   ;;  %s1489_s25 = smov %s1221_s27 }
  0xa4   : > { %s1490_s26 = smov %s1493_s30  ;;  %s1491_s27 = smov %s1497_s8 }
  0xa5   :  { %17 = sbr.rel (!%p15_p3) target bundleno = 5 (0x5), region = 98 }
  0xaa   :  { %860 = vsyncpa [#allocation3], 1 }
  0xab   :  { %862 = vsyncpa [#allocation3 + $0x1], 1 }

</bundles_post_ra>
